<compile_context>
chip_gen: v7x
topology: tpu7x:2x2x1
jax: 0.10.0
libtpu: 0.0.40
codegen_flags: <defaults>
</compile_context>

<pallas_src>
import jax
import jax.numpy as jnp
from jax.experimental import pallas as pl
from jax.experimental.pallas import tpu as pltpu

LANES = 128           # f32 vreg lane width
MAX_TILE_ROWS = 2048  # 2048 * 128 * 4 B = 1 MiB per stream per buffer


def _cdiv(a: int, b: int) -> int:
    return (a + b - 1) // b


def _round_up(x: int, m: int) -> int:
    return ((x + m - 1) // m) * m


def _qvalue_kernel(w_ref, b_ref, state_ref, action_ref, out_ref):
    # w_ref: (2,) f32 SMEM, b_ref: (1,) f32 SMEM
    # state_ref / action_ref / out_ref: (tile_r, 128) VMEM blocks (native dtype)
    w_s = w_ref[0]   # weight on the state feature
    w_a = w_ref[1]   # weight on the action feature
    b = b_ref[0]
    s = state_ref[...].astype(jnp.float32)   # cast rides idle VPU slots
    a = action_ref[...].astype(jnp.float32)
    out_ref[...] = (s * w_s + a * w_a + b).astype(out_ref.dtype)


def qvalue_forward(state, action, weight, bias, *, max_tile_rows=MAX_TILE_ROWS):
    """state: (B, 1), action: (B, 1), weight: (1, 2), bias: (1,) -> (B, 1)."""
    assert state.shape == action.shape and state.shape[-1] == 1
    B = state.shape[0]
    out_dtype = state.dtype

    # Flatten is a free contiguous reshape.
    flat_s = state.reshape(-1)
    flat_a = action.reshape(-1)

    # Lane-dense (rows, 128) view.  Zero-copy when B % 128 == 0 (the perf
    # relevant case); otherwise pad only up to the next multiple of 128.
    if B % LANES == 0:
        padded_n = B
    else:
        padded_n = _round_up(B, LANES)
        pad = padded_n - B
        flat_s = jnp.pad(flat_s, (0, pad))
        flat_a = jnp.pad(flat_a, (0, pad))
    rows = padded_n // LANES
    s2d = flat_s.reshape(rows, LANES)
    a2d = flat_a.reshape(rows, LANES)

    # Tile selection: as large as possible (amortise ~0.35 us/step overhead)
    # while (a) keeping 3 streams x 2 buffers under v5e's 16 MiB scoped VMEM
    # and (b) producing >= 2 grid steps whenever rows > 8 so v7x's two
    # TensorCores both get work.  Ragged last row-blocks are handled by
    # Pallas (cdiv grid), so no padding to a tile multiple is needed.
    if rows <= 8:
        tile_r = rows                       # full-extent block
    else:
        tile_r = min(max_tile_rows, _round_up(_cdiv(rows, 2), 8))
    grid = (_cdiv(rows, tile_r),)

    w1d = weight.reshape(-1).astype(jnp.float32)   # (2,) SMEM scalars
    b1d = bias.reshape(-1).astype(jnp.float32)     # (1,)

    in_bytes = padded_n * (state.dtype.itemsize + action.dtype.itemsize)
    out_bytes = padded_n * jnp.zeros((), out_dtype).dtype.itemsize
    cost = pl.CostEstimate(
        flops=4 * padded_n,                 # 2 mul + 2 add per element
        transcendentals=0,
        bytes_accessed=int(in_bytes + out_bytes + 12),
    )

    out2d = pl.pallas_call(
        _qvalue_kernel,
        out_shape=jax.ShapeDtypeStruct((rows, LANES), out_dtype),
        grid=grid,
        in_specs=[
            pl.BlockSpec(memory_space=pltpu.MemorySpace.SMEM),   # weight (2,)
            pl.BlockSpec(memory_space=pltpu.MemorySpace.SMEM),   # bias   (1,)
            pl.BlockSpec((tile_r, LANES), lambda i: (i, 0)),     # state
            pl.BlockSpec((tile_r, LANES), lambda i: (i, 0)),     # action
        ],
        out_specs=pl.BlockSpec((tile_r, LANES), lambda i: (i, 0)),
        compiler_params=pltpu.CompilerParams(
            dimension_semantics=("parallel",),   # v7x: shard rows over 2 TCs
        ),
        cost_estimate=cost,
    )(w1d, b1d, s2d, a2d)

    flat_out = out2d.reshape(-1)
    if padded_n != B:
        flat_out = flat_out[:B]
    return flat_out.reshape(B, 1)


def qvalue_reference(state, action, weight, bias):
    x = jnp.concatenate([state, action], axis=-1)   # (B, 2)
    return x @ weight.T + bias                      # (B, 1)


if __name__ == "__main__":
    key = jax.random.PRNGKey(0)
    k_s, k_a, k_w, k_b, k_s2, k_a2, k_s3, k_a3 = jax.random.split(key, 8)

    # Deterministic Linear(2, 1) parameters (PyTorch-style uniform bound 1/sqrt(2)).
    bound = 1.0 / jnp.sqrt(2.0)
    weight = jax.random.uniform(k_w, (1, 2), minval=-bound, maxval=bound,
                                dtype=jnp.float32)
    bias = jax.random.uniform(k_b, (1,), minval=-bound, maxval=bound,
                              dtype=jnp.float32)

    def check(B, ks, ka):
        state = jax.random.normal(ks, (B, 1), dtype=jnp.float32)
        action = jax.random.normal(ka, (B, 1), dtype=jnp.float32)
        out = jax.block_until_ready(qvalue_forward(state, action, weight, bias))
        ref = qvalue_reference(state, action, weight, bias)
        assert out.shape == (B, 1), (B, out.shape)
        assert jnp.allclose(out, ref, atol=1e-5, rtol=1e-5), (B, out, ref)

    # Small primary check.
    check(8, k_s, k_a)
    # Ragged batch (B % 128 != 0): exercises the minimal pad/slice fallback.
    check(300, k_s2, k_a2)
    # Zero-copy path: B % 128 == 0, rows=24 -> tile_r=16, grid=(2,) with a
    # ragged last row block (exercises multi-step grid + boundary handling).
    check(3072, k_s3, k_a3)

    print("KERNEL_OK")
</pallas_src>

<mosaic_0001>
module attributes {stable_mosaic.version = 11 : i64} {
  func.func @_qvalue_kernel(%arg0: i32, %arg1: memref<2xf32, #tpu.memory_space<smem>>, %arg2: memref<1xf32, #tpu.memory_space<smem>>, %arg3: memref<1x128xf32, #tpu.memory_space<vmem>>, %arg4: memref<1x128xf32, #tpu.memory_space<vmem>>, %arg5: memref<1x128xf32, #tpu.memory_space<vmem>>) attributes {dimension_semantics = [#tpu.dimension_semantics<parallel>], iteration_bounds = array<i64: 1>, scalar_prefetch = 0 : i64, scratch_operands = 0 : i64, tpu.core_type = #tpu.core_type<tc>, window_params = [{transform_indices = @transform_0, window_bounds = array<i64: 2>}, {transform_indices = @transform_1, window_bounds = array<i64: 1>}, {transform_indices = @transform_2, window_bounds = array<i64: 1, 128>}, {transform_indices = @transform_3, window_bounds = array<i64: 1, 128>}, {transform_indices = @transform_4, window_bounds = array<i64: 1, 128>}]} {
    %c0 = arith.constant 0 : index
    %0 = memref.load %arg1[%c0] : memref<2xf32, #tpu.memory_space<smem>>
    %c1 = arith.constant 1 : index
    %1 = memref.load %arg1[%c1] : memref<2xf32, #tpu.memory_space<smem>>
    %c0_0 = arith.constant 0 : index
    %2 = memref.load %arg2[%c0_0] : memref<1xf32, #tpu.memory_space<smem>>
    %c0_1 = arith.constant 0 : index
    %c0_2 = arith.constant 0 : index
    %3 = vector.load %arg3[%c0_1, %c0_2] : memref<1x128xf32, #tpu.memory_space<vmem>>, vector<1x128xf32>
    %c0_3 = arith.constant 0 : index
    %c0_4 = arith.constant 0 : index
    %4 = vector.load %arg4[%c0_3, %c0_4] : memref<1x128xf32, #tpu.memory_space<vmem>>, vector<1x128xf32>
    %5 = vector.broadcast %0 : f32 to vector<1x128xf32>
    %6 = arith.mulf %3, %5 : vector<1x128xf32>
    %7 = vector.broadcast %1 : f32 to vector<1x128xf32>
    %8 = arith.mulf %4, %7 : vector<1x128xf32>
    %9 = arith.addf %6, %8 : vector<1x128xf32>
    %10 = vector.broadcast %2 : f32 to vector<1x128xf32>
    %11 = arith.addf %9, %10 : vector<1x128xf32>
    %c0_5 = arith.constant 0 : index
    %c0_6 = arith.constant 0 : index
    %12 = vector.load %arg5[%c0_5, %c0_6] : memref<1x128xf32, #tpu.memory_space<vmem>>, vector<1x128xf32>
    tpu.vector_store %arg5[%c0_5, %c0_6], %11 {strides = array<i32>} : memref<1x128xf32, #tpu.memory_space<vmem>>, vector<1x128xf32>,
    return
  }
  func.func @transform_0(%arg0: i32) -> i32 {
    %c0_i32 = arith.constant 0 : i32
    %c0_i32_0 = arith.constant 0 : i32
    return %c0_i32 : i32
  }
  func.func @transform_1(%arg0: i32) -> i32 {
    %c0_i32 = arith.constant 0 : i32
    %c0_i32_0 = arith.constant 0 : i32
    return %c0_i32 : i32
  }
  func.func @transform_2(%arg0: i32) -> (i32, i32) {
    %c0_i32 = arith.constant 0 : i32
    %c0_i32_0 = arith.constant 0 : i32
    return %arg0, %c0_i32 : i32, i32
  }
  func.func @transform_3(%arg0: i32) -> (i32, i32) {
    %c0_i32 = arith.constant 0 : i32
    %c0_i32_0 = arith.constant 0 : i32
    return %arg0, %c0_i32 : i32, i32
  }
  func.func @transform_4(%arg0: i32) -> (i32, i32) {
    %c0_i32 = arith.constant 0 : i32
    %c0_i32_0 = arith.constant 0 : i32
    return %arg0, %c0_i32 : i32, i32
  }
}

</mosaic_0001>

<bundles_post_ra>
// kernel: tpu_custom_call.1
= control target key start
LH: loop header
LB: loop body
LE: loop exit
PB: predicated region body
PF: predicated region fallthrough
CT: control target
= control target key end

     0   :  { %10 = vsyncpa [#allocation5], 0  ;;  %s152_s0 = inlined_call_operand.vmem [shape: f32[2], index: 0, kind: input, shape index: {}]   ;;  %s153_s1 = inlined_call_operand.<no memory space> [shape: f32[1], index: 1, kind: input, shape index: {}]   ;;  %s154_s2 = inlined_call_operand.vmem [shape: f32[1,128], index: 2, kind: input, shape index: {}]   ;;  %s155_s3 = inlined_call_operand.vmem [shape: f32[1,128], index: 3, kind: input, shape index: {}]   ;;  %s156_s4 = inlined_call_operand.hbm [shape: f32[1,128], index: 4, kind: output, shape index: {}]  }
   0x1   :  { %11 = vsyncpa [#allocation4], 0  ;;  %s18_s17 = sshll.u32 %s152_s0, 4  ;;  %s19_s17 = int_to_ptr.vmem [resolvable:$true] %s18_s17 }
   0x2   :  { %s63_s18 = scalar_lea.vmem %s19_s17, 16  ;;  %p68_p1 = scmp.lt.s32.totalorder %s19_s17, %s19_s17 }
   0x3   :  { %p64_p0 = scmp.ne.s32.totalorder %s19_s17, %s63_s18  ;;  %p69_p2 = scmp.lt.s32.totalorder %s63_s18, %s63_s18 }
   0x5   :  { %p70_p3 = por %p69_p2, %p68_p1 }
   0x7   :  { %p71_p4 = pnand %p70_p3, %p64_p0 }
   0x9   :  { %74 = shalt.err (!%p71_p4)
}
   0xa   :  { %s101_s19 = smov [#allocation3]  }
   0xb   :  { %21 = dma.vmem_to_smem %s19_s17, 16, %s101_s19, [#allocation5]  }
   0xc   :  { %97 = dma.done.wait [#allocation5], 16  }
   0xd   :  { %98 = vsyncadd [#allocation5], 4294967280 }
   0xe   :  { %31 = sfence }
   0xf   :  { %s32_s20 = sld [smem:[#allocation3]]  ;;  %s60_s21 = sld [smem:[#allocation3 + $0x1]]  ;;  %v35_v0 = vld [vmem:[%s154_s2] sm:$0x1]  ;;  %v42_v6 = vstv %s153_s1 }
  0x10   :  { %v36_v1 = vld [vmem:[%s155_s3] sm:$0x1]  ;;  %s102_s27 = smov [#allocation6]  }
  0x11   :  { %s51_s28 = sshll.u32 %s102_s27, 4  ;;  %s52_s28 = int_to_ptr.vmem [resolvable:$true] %s51_s28 }
  0x12   :  { %s75_s29 = scalar_lea.vmem %s52_s28, 16  ;;  %s79_s2 = scalar_lea.vmem %s52_s28, 32 }
  0x13   :  { %p76_p5 = scmp.ne.s32.totalorder %s52_s28, %s75_s29  ;;  %p80_p6 = scmp.lt.s32.totalorder %s52_s28, %s52_s28 }
  0x14   :  { %p81_p7 = scmp.lt.s32.totalorder %s79_s2, %s75_s29 }
  0x15   :  { %v37_v2 = vstv %s32_s20  ;;  %v39_v3 = vstv %s60_s21 }
  0x16   :  { %v38_v4 = vmul.f32 %v37_v2, %v35_v0  ;;  %v40_v5 = vmul.f32 %v39_v3, %v36_v1  ;;  %p82_p8 = por %p81_p7, %p80_p6 }
  0x18   :  { %v41_v7 = vadd.f32 %v40_v5, %v38_v4  ;;  %p83_p9 = pnand %p82_p8, %p76_p5 }
  0x1a   :  { %v43_v8 = vadd.f32 %v42_v6, %v41_v7 }
  0x1c   :  { %44 = vst [vmem:[#allocation6] sm:$0x1] %v43_v8 }
  0x1d   :  { %86 = shalt.err (!%p83_p9)
}
  0x1e   :  { %s87_s5 = scalar_lea.hbm %s156_s4, 16 }
  0x1f   :  { %p88_p10 = scmp.ne.s32.totalorder %s156_s4, %s87_s5  ;;  %p91_p11 = scmp.lt.u32.totalorder %s87_s5, %s156_s4 }
  0x21   :  { %p93_p12 = pnand %p91_p11, %p88_p10 }
  0x23   :  { %96 = shalt.err (!%p93_p12)
}
  0x24   :  { %54 = dma.vmem_to_hbm [thread:$0]  %s52_s28, 16, %s156_s4, [#allocation4]  }
  0x25   :  { %99 = dma.done.wait [#allocation4], 16  }
  0x26   :  { %100 = vsyncadd [#allocation4], 4294967280 }
  0x27   :  { %58 = vsyncpa [#allocation4], 1 }
  0x28   :  { %59 = vsyncpa [#allocation5], 1 }

</bundles_post_ra>
